<compile_context>
chip_gen: v7x
topology: tpu7x:2x2x1
jax: 0.10.0
libtpu: 0.0.40
codegen_flags: <defaults>
</compile_context>

<pallas_src>
import functools

import jax
import jax.numpy as jnp
from jax.experimental import pallas as pl
from jax.experimental.pallas import tpu as pltpu

LANE = 128          # lane width of the 2-D slab
BLOCK_ROWS = 4096   # 4096 x 128 x 4B = 2 MiB per f32 block


def _round_up(n, m):
    return ((n + m - 1) // m) * m


def _dropout_kernel(seed_ref, x_ref, o_ref, *, threshold31, block_rows):
    """Zero each element with prob p = threshold31 / 2^31 (no rescale)."""
    i = pl.program_id(0)
    nrows, ncols = x_ref.shape

    # Global element index of every lane in this block (bit-stable across
    # blockings since it only depends on the flattened element position).
    row = jax.lax.broadcasted_iota(jnp.int32, (nrows, ncols), 0)
    col = jax.lax.broadcasted_iota(jnp.int32, (nrows, ncols), 1)
    idx = ((i * block_rows + row) * ncols + col).astype(jnp.uint32)

    # Counter-based hash: mix (seed, index), then murmur3 fmix32 finalizer.
    seed_u = seed_ref[0].astype(jnp.uint32)
    h = idx * jnp.uint32(0x9E3779B1) + seed_u * jnp.uint32(0x85EBCA77)
    h = h ^ (h >> 16)
    h = h * jnp.uint32(0x85EBCA6B)
    h = h ^ (h >> 13)
    h = h * jnp.uint32(0xC2B2AE35)
    h = h ^ (h >> 16)

    # Keep iff top-31 bits >= p * 2^31  (drop prob = p; exact for p=0 and p=1).
    keep = (h >> 1) >= jnp.uint32(threshold31)

    x = x_ref[...]
    o_ref[...] = jnp.where(keep, x, jnp.zeros_like(x))


@functools.partial(jax.jit, static_argnames=("p",))
def dropout(x, seed, p=0.2):
    """Elementwise dropout (zero with prob p, NO rescale) as a Pallas TPU kernel."""
    orig_shape = x.shape
    total = x.size

    x_flat = x.reshape(-1)
    rem = total % LANE
    if rem:
        # TODO(synk): handle the ragged (<128-elem) tail with an in-kernel
        # masked store instead of this pad+slice round trip.
        x_flat = jnp.concatenate(
            [x_flat, jnp.zeros((LANE - rem,), dtype=x.dtype)])
    rows = x_flat.size // LANE
    x2 = x_flat.reshape(rows, LANE)

    # Block over rows. Ensure >=2 grid blocks when possible so both v7x
    # TensorCores get work; keep rows a multiple of 8 (sublane tiling).
    if rows <= 8:
        block_rows = rows
    else:
        block_rows = min(BLOCK_ROWS, _round_up(pl.cdiv(rows, 2), 8))
    grid = (pl.cdiv(rows, block_rows),)

    # Drop iff hash_top31 < p * 2^31.
    threshold31 = min(max(int(round(p * (1 << 31))), 0), 1 << 31)

    itemsize = jnp.dtype(x.dtype).itemsize
    block_bytes = block_rows * LANE * itemsize
    # in + out, double-buffered, plus slack; generous but well under every
    # generation's physical VMEM (v7x: 64 MiB/TC).
    vmem_limit = min(max(4 * block_bytes + (2 << 20), 16 << 20), 48 << 20)

    out2 = pl.pallas_call(
        functools.partial(_dropout_kernel,
                          threshold31=threshold31,
                          block_rows=block_rows),
        out_shape=jax.ShapeDtypeStruct((rows, LANE), x.dtype),
        grid_spec=pltpu.PrefetchScalarGridSpec(
            num_scalar_prefetch=1,  # seed lands in SMEM
            grid=grid,
            in_specs=[pl.BlockSpec((block_rows, LANE), lambda i, seed: (i, 0))],
            out_specs=pl.BlockSpec((block_rows, LANE), lambda i, seed: (i, 0)),
        ),
        compiler_params=pltpu.CompilerParams(
            dimension_semantics=("parallel",),
            vmem_limit_bytes=int(vmem_limit),
        ),
        cost_estimate=pl.CostEstimate(
            flops=10 * total,           # integer-hash + select work
            transcendentals=0,
            bytes_accessed=2 * total * itemsize,
        ),
    )(jnp.full((1,), seed, dtype=jnp.int32), x2)

    out_flat = out2.reshape(-1)
    if rem:
        out_flat = out_flat[:total]
    return out_flat.reshape(orig_shape)


if __name__ == "__main__":
    key = jax.random.PRNGKey(0)
    # NCHW input, small shape: batch=2, channels=4, spatial=16x16
    x = jax.random.normal(key, (2, 4, 16, 16), dtype=jnp.float32)

    y = dropout(x, 0, p=0.2)
    y = jax.block_until_ready(y)

    # sanity checks: shape/dtype preserved; non-dropped elements unchanged;
    # dropped fraction is roughly p.
    assert y.shape == x.shape and y.dtype == x.dtype
    kept = y != 0
    assert bool(jnp.all(jnp.where(kept, y == x, True)))
    frac_dropped = float(jnp.mean((y == 0).astype(jnp.float32)))
    assert 0.05 < frac_dropped < 0.45, f"unexpected drop fraction {frac_dropped}"

    print("KERNEL_OK")
</pallas_src>

<mosaic_0001>
module attributes {stable_mosaic.version = 11 : i64} {
  func.func @_dropout_kernel(%arg0: i32, %arg1: memref<1xi32, #tpu.memory_space<smem>>, %arg2: memref<8x128xf32, #tpu.memory_space<vmem>>, %arg3: memref<8x128xf32, #tpu.memory_space<vmem>>) attributes {dimension_semantics = [#tpu.dimension_semantics<parallel>], iteration_bounds = array<i64: 2>, scalar_prefetch = 1 : i64, scratch_operands = 0 : i64, tpu.core_type = #tpu.core_type<tc>, window_params = [{transform_indices = @transform_0, window_bounds = array<i64: 8, 128>}, {transform_indices = @transform_1, window_bounds = array<i64: 8, 128>}]} {
    %0 = tpu.iota {dimensions = array<i32: 0>} : vector<8x128xi32>
    %1 = tpu.iota {dimensions = array<i32: 1>} : vector<8x128xi32>
    %c8_i32 = arith.constant 8 : i32
    %2 = arith.muli %arg0, %c8_i32 : i32
    %3 = vector.broadcast %2 : i32 to vector<8x128xi32>
    %4 = arith.addi %3, %0 : vector<8x128xi32>
    %c128_i32 = arith.constant 128 : i32
    %5 = vector.broadcast %c128_i32 : i32 to vector<8x128xi32>
    %6 = arith.muli %4, %5 : vector<8x128xi32>
    %7 = arith.addi %6, %1 : vector<8x128xi32>
    %c0 = arith.constant 0 : index
    %8 = memref.load %arg1[%c0] : memref<1xi32, #tpu.memory_space<smem>>
    %c-1640531535_i32 = arith.constant -1640531535 : i32
    %9 = vector.broadcast %c-1640531535_i32 : i32 to vector<8x128xi32>
    %10 = arith.muli %7, %9 : vector<8x128xi32>
    %c-2048144777_i32 = arith.constant -2048144777 : i32
    %11 = arith.muli %8, %c-2048144777_i32 : i32
    %12 = vector.broadcast %11 : i32 to vector<8x128xi32>
    %13 = arith.addi %10, %12 : vector<8x128xi32>
    %c16_i32 = arith.constant 16 : i32
    %14 = vector.broadcast %c16_i32 : i32 to vector<8x128xi32>
    %15 = arith.shrui %13, %14 : vector<8x128xi32>
    %16 = arith.xori %13, %15 : vector<8x128xi32>
    %c-2048144789_i32 = arith.constant -2048144789 : i32
    %17 = vector.broadcast %c-2048144789_i32 : i32 to vector<8x128xi32>
    %18 = arith.muli %16, %17 : vector<8x128xi32>
    %c13_i32 = arith.constant 13 : i32
    %19 = vector.broadcast %c13_i32 : i32 to vector<8x128xi32>
    %20 = arith.shrui %18, %19 : vector<8x128xi32>
    %21 = arith.xori %18, %20 : vector<8x128xi32>
    %c-1028477387_i32 = arith.constant -1028477387 : i32
    %22 = vector.broadcast %c-1028477387_i32 : i32 to vector<8x128xi32>
    %23 = arith.muli %21, %22 : vector<8x128xi32>
    %c16_i32_0 = arith.constant 16 : i32
    %24 = vector.broadcast %c16_i32_0 : i32 to vector<8x128xi32>
    %25 = arith.shrui %23, %24 : vector<8x128xi32>
    %26 = arith.xori %23, %25 : vector<8x128xi32>
    %c1_i32 = arith.constant 1 : i32
    %27 = vector.broadcast %c1_i32 : i32 to vector<8x128xi32>
    %28 = arith.shrui %26, %27 : vector<8x128xi32>
    %c429496730_i32 = arith.constant 429496730 : i32
    %29 = vector.broadcast %c429496730_i32 : i32 to vector<8x128xi32>
    %30 = arith.cmpi uge, %28, %29 : vector<8x128xi32>
    %c0_1 = arith.constant 0 : index
    %c0_2 = arith.constant 0 : index
    %31 = vector.load %arg2[%c0_1, %c0_2] : memref<8x128xf32, #tpu.memory_space<vmem>>, vector<8x128xf32>
    %cst = arith.constant 0.000000e+00 : f32
    %32 = vector.broadcast %cst : f32 to vector<8x128xf32>
    %33 = arith.select %30, %31, %32 : vector<8x128xi1>, vector<8x128xf32>
    %c0_3 = arith.constant 0 : index
    %c0_4 = arith.constant 0 : index
    %34 = vector.load %arg3[%c0_3, %c0_4] : memref<8x128xf32, #tpu.memory_space<vmem>>, vector<8x128xf32>
    tpu.vector_store %arg3[%c0_3, %c0_4], %33 {strides = array<i32>} : memref<8x128xf32, #tpu.memory_space<vmem>>, vector<8x128xf32>,
    return
  }
  func.func @transform_0(%arg0: i32, %arg1: memref<1xi32, #tpu.memory_space<smem>>) -> (i32, i32) {
    %c0_i32 = arith.constant 0 : i32
    %c0_i32_0 = arith.constant 0 : i32
    return %arg0, %c0_i32 : i32, i32
  }
  func.func @transform_1(%arg0: i32, %arg1: memref<1xi32, #tpu.memory_space<smem>>) -> (i32, i32) {
    %c0_i32 = arith.constant 0 : i32
    %c0_i32_0 = arith.constant 0 : i32
    return %arg0, %c0_i32 : i32, i32
  }
}

</mosaic_0001>

<bundles_post_ra>
// kernel: dropout.1
= control target key start
LH: loop header
LB: loop body
LE: loop exit
PB: predicated region body
PF: predicated region fallthrough
CT: control target
= control target key end

     0   :  { %s238_s11 = smov 0   ;;  %s255_s0 = inlined_call_operand.<no memory space> [shape: s32[1], index: 0, kind: input, shape index: {}]   ;;  %s256_s1 = inlined_call_operand.vmem [shape: f32[16,128], index: 1, kind: input, shape index: {}]   ;;  %s257_s2 = inlined_call_operand.vmem [shape: f32[16,128], index: 2, kind: output, shape index: {}]  }
   0x1   :  { %7 = sst [smem:[#allocation3]] %s255_s0 }
   0x2 LB: > { %s194_s12 = sadd.s32 4294967295, %s218_s11   ;;  %p198_p0 = scmp.ge.s32.totalorder %s218_s11, 1  ;;  %s218_s11 = sphi %s238_s11, %s13_s11  }
   0x3   : > { %p88_p1 = scmp.lt.s32.totalorder %s218_s11, 3 }
   0x5   : > { %p89_p2 = pnand %p198_p0, %p88_p1 }
   0x6   : > { %v114_v0 = vlaneseq (!%p89_p2)  ;;  %s201_s13 = sshll.u32 (!%p89_p2), %s194_s12, 3  ;;  %s123_s14 = sld [smem:[#allocation3]] (!%p89_p2) }
   0x7   : > { %92 = sbr.rel (%p89_p2) target bundleno = 41 (0x29), region = 24  ;;  %v119_v1 = vstv (!%p89_p2), %s201_s13  ;;  %p106_p3 = scmp.lt.s32.totalorder (!%p89_p2), %s194_s12, 1 }
   0x8   : > { %v115_v2 = vshrl.u32 (!%p89_p2), %v114_v0, 7  ;;  %v117_v3 = vand.u32 (!%p89_p2), 127, %v114_v0 }
   0xa   : > { %v120_v4 = vadd.s32 (!%p89_p2), %v119_v1, %v115_v2 }
   0xc   : > { %v121_v5 = vmul.u32 (!%p89_p2), 128, %v120_v4  ;;  %s125_s0 = smul.u32 (!%p89_p2), 2246822519, %s123_s14 }
   0xe   : > { %v122_v6 = vadd.s32 %v121_v5, %v117_v3  ;;  %v126_v7 = vstv %s125_s0  ;;  %s259_s12 = smov (!%p106_p3, %s194_s12), 1 }
   0xf   : > { %s199_s15 = sshll.u32 %s259_s12, 3 }
  0x10   : > { %v124_v8 = vmul.u32 2654435761, %v122_v6  ;;  %s109_s18 = scalar_lea.vmem %s256_s1, %s199_s15  ;;  %s113_s21 = scalar_lea.vmem %s257_s2, %s199_s15 }
  0x11   : > { %v138_v19 = vld [vmem:[%s109_s18] sm:$0xff] }
  0x12   : > { %v127_v9 = vadd.s32 %v126_v7, %v124_v8 }
  0x14   : > { %v128_v10 = vshrl.u32 %v127_v9, 16 }
  0x16   : > { %v129_v11 = vxor.u32 %v128_v10, %v127_v9 }
  0x18   : > { %v130_v12 = vmul.u32 2246822507, %v129_v11 }
  0x1a   : > { %v131_v13 = vshrl.u32 %v130_v12, 13 }
  0x1c   : > { %v132_v14 = vxor.u32 %v131_v13, %v130_v12 }
  0x1e   : > { %v133_v15 = vmul.u32 3266489909, %v132_v14 }
  0x20   : > { %v134_v16 = vshrl.u32 %v133_v15, 16 }
  0x22   : > { %v135_v17 = vxor.u32 %v134_v16, %v133_v15 }
  0x24   : > { %v136_v18 = vshrl.u32 %v135_v17, 1 }
  0x26   : > { %vm137_vm0 = vcmp.ge.u32.totalorder %v136_v18, 429496730 }
  0x27   : > { %v139_v20 = vsel %vm137_vm0, %v138_v19, 0.0 }
  0x28   : > { %140 = vst [vmem:[%s113_s21] sm:$0xff] %v139_v20 }
  0x29 PF: > { %s13_s11 = sadd.s32 1, %s218_s11  }
  0x2a   : > { %p10_p4 = scmp.ge.s32.totalorder %s13_s11, 4  }
  0x2c   :  { %12 = sbr.rel (!%p10_p4) target bundleno = 2 (0x2), region = 54 }

</bundles_post_ra>
